<compile_context>
chip_gen: v5e
topology: v5e:2x2
jax: 0.10.0
libtpu: 0.0.40
codegen_flags: <defaults>
</compile_context>

<pallas_src>
import functools

import jax
import jax.numpy as jnp
from jax.experimental import pallas as pl
from jax.experimental.pallas import tpu as pltpu


def _round_up(x: int, m: int) -> int:
    return (x + m - 1) // m * m


def _patch_embed_kernel(x_ref, w_ref, b_ref, o_ref):
    # x_ref: (1, Kp, TN)  K-major patch tile (streamed over the grid)
    # w_ref: (Fp, Kp)     projection weight (resident, constant index_map)
    # b_ref: (Fp, 1)      bias, f32 (resident)
    # o_ref: (1, Fp, TN)  output tile, already in (features, tokens) layout
    acc = jnp.dot(w_ref[...], x_ref[0], preferred_element_type=jnp.float32)
    o_ref[0] = (acc + b_ref[...]).astype(o_ref.dtype)


@functools.partial(
    jax.jit,
    static_argnames=("patch_size", "block_n", "compute_dtype", "out_dtype"))
def patch_embed(image_bchw, weight_fcpp, bias_f, *, patch_size, block_n=1024,
                compute_dtype=None, out_dtype=None):
    """Equivalent to nn.Conv2d(C, F, kernel_size=P, stride=P)(image_bchw).

    image_bchw: (B, C, Hin, Win)
    weight_fcpp: (F, C, P, P)
    bias_f: (F,)
    returns: (B, F, H, W) with H = Hin // P, W = Win // P

    compute_dtype: dtype used to stream x/w through the kernel (default: bf16
      when the input is f32); accumulation is always f32.
    out_dtype: output dtype (default: input dtype, matching the module).
    """
    B, C, Hin, Win = image_bchw.shape
    F = weight_fcpp.shape[0]
    P = patch_size
    H, W = Hin // P, Win // P
    N = H * W
    K = C * P * P

    # Conv2d with stride == kernel silently drops trailing rows/cols that do
    # not fill a whole patch; match that by cropping.
    image_bchw = image_bchw[:, :, :H * P, :W * P]

    if out_dtype is None:
        out_dtype = image_bchw.dtype
    if compute_dtype is None:
        # Stream activations/weights in bf16 (f32 accumulation) when the input
        # is f32: halves HBM traffic on this memory-bound op and uses the
        # MXU's native bf16 datapath on all generations.
        compute_dtype = (jnp.bfloat16 if image_bchw.dtype == jnp.float32
                         else image_bchw.dtype)
    out_dtype = jnp.dtype(out_dtype)
    compute_dtype = jnp.dtype(compute_dtype)
    in_item = compute_dtype.itemsize
    out_item = out_dtype.itemsize

    # Alignment: K padded to 128 (lane-dense weight / dense MXU contraction);
    # F padded to the sublane packing of the narrowest dtype touching it;
    # token axis tiled by TN (multiple of 128 -> lane-dense, unmasked stores).
    Kp = _round_up(K, 128)
    f_align = max(8, 32 // out_item, 32 // in_item)
    Fp = _round_up(F, f_align)
    block_n = _round_up(int(block_n), 128)
    TN = min(block_n, _round_up(N, 128))
    if B == 1:
        # Keep at least two token tiles so both v7x TensorCores get work.
        TN = min(TN, _round_up(pl.cdiv(N, 2), 128))
    TN = max(TN, 128)
    Np = _round_up(N, TN)

    # K-major patch matrix: x[b, (c,i,j), h*W + w]. This is the only wrapper
    # relayout pass over the image.
    # TODO(synk): fold this im2col into the kernel's DMA (BlockSpec over the
    # free (B,C,H,P,W,P) view + in-kernel relayout) to drop this HBM pass.
    x = image_bchw.reshape(B, C, H, P, W, P)
    x = jnp.transpose(x, (0, 1, 3, 5, 2, 4)).reshape(B, K, N)
    if x.dtype != compute_dtype:
        x = x.astype(compute_dtype)
    if (Kp - K) or (Np - N):
        # Skipped in the common ViT case (K multiple of 128, N multiple of
        # TN), which avoids materializing a second padded copy of the
        # activations in HBM before the kernel reads them.
        x = jnp.pad(x, ((0, 0), (0, Kp - K), (0, Np - N)))

    w = weight_fcpp.reshape(F, K).astype(compute_dtype)
    if (Fp - F) or (Kp - K):
        w = jnp.pad(w, ((0, Fp - F), (0, Kp - K)))
    b = jnp.pad(bias_f.astype(jnp.float32), (0, Fp - F)).reshape(Fp, 1)

    grid = (B, Np // TN)

    # VMEM budget: double-buffered x / out tiles + resident weight & bias.
    # TODO(synk): pipeline_mode=pl.Buffered(1) on the weight/bias specs would
    # drop their (dead) second buffer; left at the default for portability.
    vmem_est = (2 * Kp * TN * in_item            # x tiles
                + 2 * Fp * Kp * in_item          # weight
                + 2 * Fp * 128 * 4               # bias (lane-padded)
                + 2 * Fp * TN * out_item)        # output tiles
    try:
        vmem_cap = int(pltpu.get_tpu_info().vmem_capacity_bytes)
    except Exception:  # conservative fallback = v7x per-core capacity
        vmem_cap = 64 << 20
    vmem_limit = max(32 << 20, int(1.5 * vmem_est) + (4 << 20))
    vmem_limit = min(vmem_limit, (vmem_cap * 3) // 4)

    cost = pl.CostEstimate(
        flops=2 * B * Np * Kp * Fp,
        transcendentals=0,
        bytes_accessed=(B * Kp * Np + Fp * Kp) * in_item + Fp * 4
        + B * Fp * Np * out_item,
    )

    out = pl.pallas_call(
        _patch_embed_kernel,
        out_shape=jax.ShapeDtypeStruct((B, Fp, Np), out_dtype),
        grid_spec=pltpu.PrefetchScalarGridSpec(
            num_scalar_prefetch=0,
            grid=grid,
            in_specs=[
                pl.BlockSpec((1, Kp, TN), lambda bb, i: (bb, 0, i)),  # stream
                pl.BlockSpec((Fp, Kp), lambda bb, i: (0, 0)),         # resident
                pl.BlockSpec((Fp, 1), lambda bb, i: (0, 0)),          # resident
            ],
            out_specs=pl.BlockSpec((1, Fp, TN), lambda bb, i: (bb, 0, i)),
        ),
        compiler_params=pltpu.CompilerParams(
            dimension_semantics=("parallel", "parallel"),  # v7x: both TCs busy
            vmem_limit_bytes=vmem_limit,
        ),
        cost_estimate=cost,
    )(x, w, b)

    # (B, Fp, Np) -> (B, F, H, W). The slices are no-ops (and the reshape is
    # free) in the common case where F and H*W needed no padding, so there is
    # no post-kernel HBM pass over the output.
    return out[:, :F, :N].reshape(B, F, H, W)


if __name__ == "__main__":
    # Small shapes consistent with the module: B x C x Hin x Win with
    # patch_size dividing the spatial dims.
    B, C, Hin, Win = 2, 3, 32, 32
    P = 8                       # patch_size_px
    F = 32                      # features_per_token

    key = jax.random.PRNGKey(0)
    k_img, k_w, k_b = jax.random.split(key, 3)

    image = jax.random.normal(k_img, (B, C, Hin, Win), dtype=jnp.float32)
    weight = jax.random.normal(k_w, (F, C, P, P), dtype=jnp.float32) * 0.02
    bias = jax.random.normal(k_b, (F,), dtype=jnp.float32) * 0.02

    # Reference: plain-JAX strided conv == patch matmul.
    H, W = Hin // P, Win // P
    xp = image.reshape(B, C, H, P, W, P).transpose(0, 2, 4, 1, 3, 5)
    ref = jnp.einsum("bhwcij,fcij->bfhw", xp, weight) + bias[None, :, None, None]

    # Default path: bf16 streaming, f32 accumulation (loose tolerance).
    out = patch_embed(image, weight, bias, patch_size=P)
    jax.block_until_ready(out)
    assert out.shape == (B, F, H, W)
    assert out.dtype == image.dtype
    assert jnp.allclose(out, ref, atol=3e-2, rtol=3e-2)

    # Full-precision path: tight check of indexing / matmul semantics.
    out_f32 = patch_embed(image, weight, bias, patch_size=P,
                          compute_dtype=jnp.float32)
    jax.block_until_ready(out_f32)
    assert jnp.allclose(out_f32, ref, atol=1e-4, rtol=1e-4)

    print("KERNEL_OK")
</pallas_src>

<mosaic_0001>
module attributes {stable_mosaic.version = 11 : i64} {
  func.func @_patch_embed_kernel(%arg0: i32, %arg1: i32, %arg2: memref<1x256x128xbf16, #tpu.memory_space<vmem>>, %arg3: memref<32x256xbf16, #tpu.memory_space<vmem>>, %arg4: memref<32x1xf32, #tpu.memory_space<vmem>>, %arg5: memref<1x32x128xf32, #tpu.memory_space<vmem>>) attributes {dimension_semantics = [#tpu.dimension_semantics<parallel>, #tpu.dimension_semantics<parallel>], iteration_bounds = array<i64: 2, 1>, scalar_prefetch = 0 : i64, scratch_operands = 0 : i64, tpu.core_type = #tpu.core_type<tc>, window_params = [{transform_indices = @transform_0, window_bounds = array<i64: 1, 256, 128>}, {pipeline_mode = #tpu.pipeline_mode<synchronous>, transform_indices = @transform_1, window_bounds = array<i64: 32, 256>}, {pipeline_mode = #tpu.pipeline_mode<synchronous>, transform_indices = @transform_2, window_bounds = array<i64: 32, 1>}, {transform_indices = @transform_3, window_bounds = array<i64: 1, 32, 128>}]} {
    %c0 = arith.constant 0 : index
    %c0_0 = arith.constant 0 : index
    %0 = vector.load %arg3[%c0, %c0_0] : memref<32x256xbf16, #tpu.memory_space<vmem>>, vector<32x256xbf16>
    %c0_1 = arith.constant 0 : index
    %c0_2 = arith.constant 0 : index
    %c0_3 = arith.constant 0 : index
    %1 = vector.load %arg2[%c0_1, %c0_2, %c0_3] : memref<1x256x128xbf16, #tpu.memory_space<vmem>>, vector<1x256x128xbf16>
    %2 = vector.shape_cast %1 : vector<1x256x128xbf16> to vector<256x128xbf16>
    %cst = arith.constant dense<0.000000e+00> : vector<32x128xf32>
    %3 = tpu.matmul %0, %2, %cst {dimension_numbers = #tpu.dot_dimension_numbers<[1], [0], [0], [1], [0, 0, 1, 1], [], []>} : vector<32x256xbf16>, vector<256x128xbf16>, vector<32x128xf32> -> vector<32x128xf32>
    %c0_4 = arith.constant 0 : index
    %c0_5 = arith.constant 0 : index
    %4 = vector.load %arg4[%c0_4, %c0_5] : memref<32x1xf32, #tpu.memory_space<vmem>>, vector<32x1xf32>
    %5 = vector.broadcast %4 : vector<32x1xf32> to vector<32x128xf32>
    %6 = arith.addf %3, %5 : vector<32x128xf32>
    %c0_6 = arith.constant 0 : index
    %c0_7 = arith.constant 0 : index
    %c0_8 = arith.constant 0 : index
    %7 = vector.load %arg5[%c0_6, %c0_7, %c0_8] : memref<1x32x128xf32, #tpu.memory_space<vmem>>, vector<1x32x128xf32>
    %8 = vector.shape_cast %7 : vector<1x32x128xf32> to vector<32x128xf32>
    %9 = vector.shape_cast %6 : vector<32x128xf32> to vector<1x32x128xf32>
    tpu.vector_store %arg5[%c0_6, %c0_7, %c0_8], %9 {strides = array<i32>} : memref<1x32x128xf32, #tpu.memory_space<vmem>>, vector<1x32x128xf32>,
    return
  }
  func.func @transform_0(%arg0: i32, %arg1: i32) -> (i32, i32, i32) {
    %c0_i32 = arith.constant 0 : i32
    %c0_i32_0 = arith.constant 0 : i32
    return %arg0, %c0_i32, %arg1 : i32, i32, i32
  }
  func.func @transform_1(%arg0: i32, %arg1: i32) -> (i32, i32) {
    %c0_i32 = arith.constant 0 : i32
    %c0_i32_0 = arith.constant 0 : i32
    %c0_i32_1 = arith.constant 0 : i32
    return %c0_i32, %c0_i32_0 : i32, i32
  }
  func.func @transform_2(%arg0: i32, %arg1: i32) -> (i32, i32) {
    %c0_i32 = arith.constant 0 : i32
    %c0_i32_0 = arith.constant 0 : i32
    %c0_i32_1 = arith.constant 0 : i32
    return %c0_i32, %c0_i32_0 : i32, i32
  }
  func.func @transform_3(%arg0: i32, %arg1: i32) -> (i32, i32, i32) {
    %c0_i32 = arith.constant 0 : i32
    %c0_i32_0 = arith.constant 0 : i32
    return %arg0, %c0_i32, %arg1 : i32, i32, i32
  }
}

</mosaic_0001>

<bundles_post_ra>
// kernel: patch_embed.1
= control target key start
LH: loop header
LB: loop body
LE: loop exit
PB: predicated region body
PF: predicated region fallthrough
CT: control target
= control target key end

     0   :  { %s704_s12 = smov 0   ;;  %s706_s13 = smov 0   ;;  %s795_s0 = inlined_call_operand.vmem [shape: bf16[2,256,128], index: 0, kind: input, shape index: {}]   ;;  %s796_s1 = inlined_call_operand.vmem [shape: bf16[32,256], index: 1, kind: input, shape index: {}]   ;;  %s797_s2 = inlined_call_operand.vmem [shape: f32[32,1], index: 2, kind: input, shape index: {}]   ;;  %s798_s3 = inlined_call_operand.vmem [shape: f32[2,32,128], index: 3, kind: output, shape index: {}]  }
   0x1   :  { %s708_s14 = smov 0  }
   0x2 LB: > { %s25_s15 = sadd.s32 1, %s677_s13  ;;  %p507_p0 = scmp.ge.s32.totalorder %s681_s14, 1  ;;  %s681_s14 = sphi %s708_s14, %s13_s14   ;;  %s677_s13 = sphi %s706_s13, %s800_s13   ;;  %s673_s12 = sphi %s704_s12, %s799_s12  }
   0x3   : > { %p27_p1 = scmp.ge.s32.totalorder %s25_s15, 2  ;;  %p156_p2 = scmp.lt.s32.totalorder %s681_s14, 3 }
   0x5   : > { %s802_s15 = smov (%p27_p1, %s25_s15), 0  ;;  %p157_p3 = pnand %p507_p0, %p156_p2 }
   0x6   : > { %p186_p4 = scmp.lt.s32.totalorder (!%p157_p3), %s673_s12, 1 }
   0x7   : > { %160 = sbr.rel (%p157_p3) target bundleno = 192 (0xc0), region = 32 }
   0xc   : > { %s804_s12 = smov (!%p186_p4, %s673_s12), 1  ;;  %v683_v4 = vmov 0   ;;  %v240_v7 = vld [vmem:[%s797_s2 + $0x10] sm:$0xff]  ;;  %v238_v8 = vld [vmem:[%s797_s2] sm:$0xff]  ;;  %v241_v11 = vld [vmem:[%s797_s2 + $0x18] sm:$0xff] }
   0xd   : > { %s594_s16 = sshll.u32 %s804_s12, 7  ;;  %658 = vset.pattern.permute.xlu1 %v683_v4  ;;  %657 = vset.pattern.permute.xlu0 %v683_v4  ;;  %v239_v12 = vld [vmem:[%s797_s2 + $0x8] sm:$0xff]  ;;  %v514_v19 = vld [vmem:[%s796_s1] sm:$0xf]  ;;  %v522_v22 = vld [vmem:[%s796_s1 + $0x10] sm:$0xf] }
   0xe   : > { %s728_s19 = scalar_lea.vmem %s795_s0, %s594_s16  ;;  %254 = vperm.xlu1 %658, %v240_v7   ;;  %244 = vperm.xlu0 %657, %v238_v8   ;;  %v597_v21 = vld [vmem:[%s796_s1 + $0x4] sm:$0xf0]  ;;  %v599_v24 = vld [vmem:[%s796_s1 + $0x14] sm:$0xf0]  ;;  %v596_v25 = vld [vmem:[%s796_s1 + $0x4] sm:$0xf] }
   0xf   : > { %v607_v0 = vld [vmem:[%s728_s19 + $0x38] sm:$0xff]  ;;  %v606_v2 = vld [vmem:[%s728_s19 + $0x30] sm:$0xff]  ;;  %v605_v5 = vld [vmem:[%s728_s19 + $0x28] sm:$0xff]  ;;  %v515_v29 = vor.u32 %v597_v21, %v514_v19  ;;  %v523_v30 = vor.u32 %v599_v24, %v522_v22  ;;  %s595_s21 = sshll.u32 %s804_s12, 5 }
  0x10   : > { %v615_v1 = vld [vmem:[%s728_s19 + $0x78] sm:$0xff]  ;;  %378 = vmatpush.bf16.msra.mxu0 %v607_v0  ;;  %616 = vmatpush.bf16.msra.mxu2 %v607_v0  ;;  %v614_v3 = vld [vmem:[%s728_s19 + $0x70] sm:$0xff]  ;;  %v613_v6 = vld [vmem:[%s728_s19 + $0x68] sm:$0xff]  ;;  %s201_s24 = scalar_lea.vmem %s798_s3, %s595_s21 }
  0x11   : > { %397 = vmatpush.bf16.msra.mxu1 %v615_v1  ;;  %624 = vmatpush.bf16.msra.mxu3 %v615_v1  ;;  %v604_v9 = vld [vmem:[%s728_s19 + $0x20] sm:$0xff]  ;;  %v603_v13 = vld [vmem:[%s728_s19 + $0x18] sm:$0xff]  ;;  %v602_v15 = vld [vmem:[%s728_s19 + $0x10] sm:$0xff] }
  0x12   : > { %v612_v10 = vld [vmem:[%s728_s19 + $0x60] sm:$0xff]  ;;  %v611_v14 = vld [vmem:[%s728_s19 + $0x58] sm:$0xff]  ;;  %v610_v16 = vld [vmem:[%s728_s19 + $0x50] sm:$0xff] }
  0x13   : > { %v601_v17 = vld [vmem:[%s728_s19 + $0x8] sm:$0xff]  ;;  %v600_v20 = vld [vmem:[%s728_s19] sm:$0xff]  ;;  %v598_v27 = vld [vmem:[%s796_s1 + $0x14] sm:$0xf] }
  0x14   : > { %379 = vmatpush.bf16.msra.mxu0 %v606_v2  ;;  %617 = vmatpush.bf16.msra.mxu2 %v606_v2  ;;  %v609_v18 = vld [vmem:[%s728_s19 + $0x48] sm:$0xff]  ;;  %v608_v23 = vld [vmem:[%s728_s19 + $0x40] sm:$0xff]  ;;  %v524_v28 = vld [vmem:[%s796_s1 + $0x18] sm:$0xf0] }
  0x15   : > { %398 = vmatpush.bf16.msra.mxu1 %v614_v3  ;;  %625 = vmatpush.bf16.msra.mxu3 %v614_v3  ;;  %v516_v26 = vld [vmem:[%s796_s1 + $0x8] sm:$0xf0]  ;;  %v527_v32 = vor.u32 %v598_v27, %v524_v28 }
  0x16   : > { %259 = vperm.xlu1 %658, %v241_v11   ;;  %249 = vperm.xlu0 %657, %v239_v12   ;;  %v519_v31 = vor.u32 %v596_v25, %v516_v26 }
  0x18   : > { %380 = vmatpush.bf16.msra.mxu0 %v605_v5  ;;  %618 = vmatpush.bf16.msra.mxu2 %v605_v5 }
  0x19   : > { %399 = vmatpush.bf16.msra.mxu1 %v613_v6  ;;  %626 = vmatpush.bf16.msra.mxu3 %v613_v6 }
  0x1c   : > { %381 = vmatpush.bf16.msra.mxu0 %v604_v9  ;;  %619 = vmatpush.bf16.msra.mxu2 %v604_v9 }
  0x1d   : > { %400 = vmatpush.bf16.msra.mxu1 %v612_v10  ;;  %627 = vmatpush.bf16.msra.mxu3 %v612_v10 }
  0x20   : > { %382 = vmatpush.bf16.msra.mxu0 %v603_v13  ;;  %620 = vmatpush.bf16.msra.mxu2 %v603_v13 }
  0x21   : > { %401 = vmatpush.bf16.msra.mxu1 %v611_v14  ;;  %628 = vmatpush.bf16.msra.mxu3 %v611_v14 }
  0x24   : > { %383 = vmatpush.bf16.msra.mxu0 %v602_v15  ;;  %621 = vmatpush.bf16.msra.mxu2 %v602_v15 }
  0x25   : > { %402 = vmatpush.bf16.msra.mxu1 %v610_v16  ;;  %629 = vmatpush.bf16.msra.mxu3 %v610_v16 }
  0x28   : > { %384 = vmatpush.bf16.msra.mxu0 %v601_v17  ;;  %622 = vmatpush.bf16.msra.mxu2 %v601_v17 }
  0x29   : > { %403 = vmatpush.bf16.msra.mxu1 %v609_v18  ;;  %630 = vmatpush.bf16.msra.mxu3 %v609_v18 }
  0x2c   : > { %385 = vmatpush.bf16.msra.mxu0 %v600_v20  ;;  %623 = vmatpush.bf16.msra.mxu2 %v600_v20 }
  0x2d   : > { %404 = vmatpush.bf16.msra.mxu1 %v608_v23  ;;  %631 = vmatpush.bf16.msra.mxu3 %v608_v23 }
  0x2f   : > { %386 = vmatmul.bf16.vlgmr.msra.gmra.mxu0 %v515_v29  ;;  %391 = vmatmul.bf16.vlgmr.msra.gmra.mxu2 %v523_v30 }
  0x30   : > { %405 = vmatmul.bf16.vlgmr.msra.gmra.mxu1 %v519_v31  ;;  %410 = vmatmul.bf16.vlgmr.msra.gmra.mxu3 %v527_v32 }
  0x80   : > { %v245_v33 = vpop.permute.xlu0 %244  ;;  %v255_v38 = vpop.permute.xlu1 %254 }
  0x88   : > { %v250_v42 = vpop.permute.xlu0 %249  ;;  %v260_v48 = vpop.permute.xlu1 %259 }
  0xac   : > { %v387_v34 = vpop.f32.mrf.mxu0 }
  0xad   : > { %v388_v35 = vadd.f32 %v387_v34, %v245_v33  ;;  %v406_v36 = vpop.f32.mrf.mxu1 }
  0xaf   : > { %v407_v37 = vadd.f32 %v406_v36, %v388_v35 }
  0xb1   : > { %416 = vst [vmem:[%s201_s24] sm:$0xff] %v407_v37 }
  0xb2   : > { %v392_v39 = vpop.f32.mrf.mxu2 }
  0xb3   : > { %v393_v40 = vadd.f32 %v392_v39, %v255_v38  ;;  %v411_v41 = vpop.f32.mrf.mxu3 }
  0xb4   : > { %v389_v43 = vpop.f32.mrf.mxu0 }
  0xb5   : > { %v412_v44 = vadd.f32 %v411_v41, %v393_v40  ;;  %v390_v45 = vadd.f32 %v389_v43, %v250_v42  ;;  %v408_v46 = vpop.f32.mrf.mxu1 }
  0xb7   : > { %418 = vst [vmem:[%s201_s24 + $0x10] sm:$0xff] %v412_v44  ;;  %v409_v47 = vadd.f32 %v408_v46, %v390_v45 }
  0xb9   : > { %417 = vst [vmem:[%s201_s24 + $0x8] sm:$0xff] %v409_v47 }
  0xba   : > { %v394_v49 = vpop.f32.mrf.mxu2 }
  0xbb   : > { %v395_v50 = vadd.f32 %v394_v49, %v260_v48  ;;  %v413_v51 = vpop.f32.mrf.mxu3 }
  0xbd   : > { %v414_v52 = vadd.f32 %v413_v51, %v395_v50 }
  0xbf   : > { %419 = vst [vmem:[%s201_s24 + $0x18] sm:$0xff] %v414_v52 }
  0xc0 PF: > { %s13_s14 = sadd.s32 1, %s681_s14   ;;  %s799_s12 = smov %s677_s13 }
  0xc1   : > { %p10_p5 = scmp.ge.s32.totalorder %s13_s14, 4   ;;  %s800_s13 = smov %s802_s15 }
  0xc3   :  { %12 = sbr.rel (!%p10_p5) target bundleno = 2 (0x2), region = 62 }

</bundles_post_ra>
